<compile_context>
chip_gen: v7x
topology: tpu7x:2x2x1
jax: 0.10.0
libtpu: 0.0.40
codegen_flags: <defaults>
</compile_context>

<pallas_src>
import jax
import jax.numpy as jnp
import numpy as np
from jax.experimental import pallas as pl
from jax.experimental.pallas import tpu as pltpu


def _round_up(x, m):
    return (x + m - 1) // m * m


def _pick_tile_rows(M, Kp, Np, in_bytes, budget_bytes=12 * 1024 * 1024):
    """Largest row tile (<=1024, multiple of 8) whose double-buffered input +
    f32 output tiles plus the resident weight fit a conservative scoped-VMEM
    budget (safe across v5e's 16 MiB default and v7x's smaller VMEM)."""
    weight_bytes = 2 * Kp * Np * in_bytes
    per_row = 2 * (Kp * in_bytes + Np * 4)
    tm = (budget_bytes - weight_bytes) // max(per_row, 1)
    tm = int(min(1024, max(8, tm)))
    tm = min(tm, _round_up(M, 8))
    return max(8, (tm // 8) * 8)


def _stats_kernel(x_ref, w_ref, sum_ref, sumsq_ref):
    """Pass 1: y = relu(x) @ W ; accumulate per-channel sum(y) and sum(y*y)."""
    @pl.when(pl.program_id(0) == 0)
    def _init():
        sum_ref[...] = jnp.zeros_like(sum_ref)
        sumsq_ref[...] = jnp.zeros_like(sumsq_ref)

    y = jnp.dot(jnp.maximum(x_ref[...], 0), w_ref[...],
                preferred_element_type=jnp.float32)
    sum_ref[...] += jnp.sum(y, axis=0, keepdims=True)
    sumsq_ref[...] += jnp.sum(y * y, axis=0, keepdims=True)


def _apply_kernel(x_ref, w_ref, scale_ref, shift_ref, o_ref):
    """Pass 2: y = relu(x) @ W ; out = y * scale + shift (full-width store)."""
    y = jnp.dot(jnp.maximum(x_ref[...], 0), w_ref[...],
                preferred_element_type=jnp.float32)
    o_ref[...] = (y * scale_ref[...] + shift_ref[...]).astype(o_ref.dtype)


def factorized_reduce(x_nchw, w1, w2, gamma, beta, *, eps=1e-5,
                      compute_dtype=None, tile_rows=None):
    """FactorizedReduce forward.

    x_nchw : (N, C_in, H, W), H and W even.
    w1, w2 : (C_in, C_out//2)  (Conv2d weight (Co/2, Ci, 1, 1) reshaped+transposed).
    gamma, beta : (C_out,) BatchNorm affine parameters.
    Returns (N, C_out, H//2, W//2) float32 (NCHW, like PyTorch).
    """
    N, C_in, H, W = x_nchw.shape
    C_half = w1.shape[1]
    C_out = 2 * C_half
    Ho, Wo = H // 2, W // 2
    M = N * Ho * Wo

    if compute_dtype is None:
        compute_dtype = x_nchw.dtype
    in_bytes = jnp.dtype(compute_dtype).itemsize

    K = 2 * C_in
    Kp = _round_up(K, 128)       # lane-align the contraction dim for the MXU
    Np = _round_up(C_out, 128)   # lane-dense output stores

    if tile_rows is None:
        tile_rows = _pick_tile_rows(M, Kp, Np, in_bytes)
    tm = max(8, (int(tile_rows) // 8) * 8)
    Mp = _round_up(M, tm)
    n_tiles = Mp // tm

    # ---- glue: NCHW -> packed (Mp, Kp) activations  [xe | xo | zero pad] ----
    # relu commutes with the strided subsample, so relu stays in the kernel.
    x_nhwc = jnp.transpose(x_nchw, (0, 2, 3, 1))
    xe = x_nhwc[:, 0::2, 0::2, :].reshape(M, C_in)   # conv_1 taps (even rows/cols)
    xo = x_nhwc[:, 1::2, 1::2, :].reshape(M, C_in)   # conv_2 taps == x[:,:,1:,1:] stride 2
    x_packed = jnp.concatenate([xe, xo], axis=1).astype(compute_dtype)
    x_packed = jnp.pad(x_packed, ((0, Mp - M), (0, Kp - K)))
    # TODO(synk): the NCHW->packed gather/transpose above remains one fused XLA
    # pass; fusing it into the kernel would require manual strided DMA from NCHW.

    # Block-diagonal packed weight: one matmul produces both conv halves.
    w_packed = jnp.zeros((Kp, Np), compute_dtype)
    w_packed = w_packed.at[:C_in, :C_half].set(w1.astype(compute_dtype))
    w_packed = w_packed.at[C_in:K, C_half:C_out].set(w2.astype(compute_dtype))

    # ---- pass 1: per-channel sum / sum-of-squares over all valid rows ----
    y_sum, y_sumsq = pl.pallas_call(
        _stats_kernel,
        out_shape=(jax.ShapeDtypeStruct((1, Np), jnp.float32),
                   jax.ShapeDtypeStruct((1, Np), jnp.float32)),
        grid_spec=pltpu.PrefetchScalarGridSpec(
            num_scalar_prefetch=0,
            grid=(n_tiles,),
            in_specs=[pl.BlockSpec((tm, Kp), lambda i: (i, 0)),
                      pl.BlockSpec((Kp, Np), lambda i: (0, 0))],
            out_specs=[pl.BlockSpec((1, Np), lambda i: (0, 0)),
                       pl.BlockSpec((1, Np), lambda i: (0, 0))]),
        compiler_params=pltpu.CompilerParams(
            dimension_semantics=("arbitrary",)),   # resident accumulators
    )(x_packed, w_packed)

    # ---- fold BatchNorm (biased batch stats) into per-channel scale/shift ----
    # Zero-padded rows contribute nothing; divide by the true M.
    mean = y_sum[0] / M
    var = jnp.maximum(y_sumsq[0] / M - mean * mean, 0.0)
    gamma_p = jnp.pad(gamma.astype(jnp.float32), (0, Np - C_out))
    beta_p = jnp.pad(beta.astype(jnp.float32), (0, Np - C_out))
    inv_std = jax.lax.rsqrt(var + eps)
    scale = (gamma_p * inv_std).reshape(1, Np)
    shift = (beta_p - mean * gamma_p * inv_std).reshape(1, Np)

    # ---- pass 2: recompute y per tile and apply the folded affine (one FMA) ----
    out_flat = pl.pallas_call(
        _apply_kernel,
        out_shape=jax.ShapeDtypeStruct((Mp, Np), jnp.float32),
        grid_spec=pltpu.PrefetchScalarGridSpec(
            num_scalar_prefetch=0,
            grid=(n_tiles,),
            in_specs=[pl.BlockSpec((tm, Kp), lambda i: (i, 0)),
                      pl.BlockSpec((Kp, Np), lambda i: (0, 0)),
                      pl.BlockSpec((1, Np), lambda i: (0, 0)),
                      pl.BlockSpec((1, Np), lambda i: (0, 0))],
            out_specs=pl.BlockSpec((tm, Np), lambda i: (i, 0))),
        compiler_params=pltpu.CompilerParams(
            dimension_semantics=("parallel",)),    # independent tiles (v7x 2 TCs)
    )(x_packed, w_packed, scale, shift)

    out = out_flat[:M, :C_out].reshape(N, Ho, Wo, C_out)
    return jnp.transpose(out, (0, 3, 1, 2))        # back to NCHW


def _reference(x, w1, w2, gamma, beta, eps=1e-5):
    """Pure-JAX reference mimicking the PyTorch forward (training-mode BN)."""
    xr = jnp.maximum(x, 0.0)
    h1 = jnp.einsum('nchw,cd->ndhw', xr[:, :, 0::2, 0::2], w1)
    h2 = jnp.einsum('nchw,cd->ndhw', xr[:, :, 1::2, 1::2], w2)
    h = jnp.concatenate([h1, h2], axis=1)
    mean = jnp.mean(h, axis=(0, 2, 3), keepdims=True)
    var = jnp.mean(jnp.square(h - mean), axis=(0, 2, 3), keepdims=True)
    hn = (h - mean) * jax.lax.rsqrt(var + eps)
    return hn * gamma.reshape(1, -1, 1, 1) + beta.reshape(1, -1, 1, 1)


if __name__ == "__main__":
    N, C_in, C_out, H, W = 2, 4, 8, 16, 16

    key = jax.random.PRNGKey(0)
    kx, k1, k2 = jax.random.split(key, 3)
    x = jax.random.normal(kx, (N, C_in, H, W), jnp.float32)
    # Conv2d weights (C_out//2, C_in, 1, 1) stored pre-reshaped/transposed.
    w1 = 0.1 * jax.random.normal(k1, (C_in, C_out // 2), jnp.float32)
    w2 = 0.1 * jax.random.normal(k2, (C_in, C_out // 2), jnp.float32)
    gamma = jnp.ones((C_out,), jnp.float32)   # BatchNorm2d default init
    beta = jnp.zeros((C_out,), jnp.float32)

    fr = jax.jit(factorized_reduce,
                 static_argnames=("eps", "compute_dtype", "tile_rows"))

    out = jax.block_until_ready(fr(x, w1, w2, gamma, beta))
    ref = jax.block_until_ready(_reference(x, w1, w2, gamma, beta))
    assert out.shape == (N, C_out, H // 2, W // 2)
    assert np.allclose(np.asarray(out), np.asarray(ref), atol=2e-3, rtol=2e-3)

    # bf16 activations/weights on the MXU (f32 accumulation, f32 BN math).
    out_bf16 = jax.block_until_ready(
        fr(x, w1, w2, gamma, beta, compute_dtype=jnp.bfloat16))
    assert out_bf16.shape == (N, C_out, H // 2, W // 2)
    assert np.allclose(np.asarray(out_bf16), np.asarray(ref), atol=1e-1, rtol=1e-1)

    print("KERNEL_OK")
</pallas_src>

<mosaic_0001>
module attributes {stable_mosaic.version = 11 : i64} {
  func.func @_apply_kernel(%arg0: i32, %arg1: memref<128x128xf32, #tpu.memory_space<vmem>>, %arg2: memref<128x128xf32, #tpu.memory_space<vmem>>, %arg3: memref<1x128xf32, #tpu.memory_space<vmem>>, %arg4: memref<1x128xf32, #tpu.memory_space<vmem>>, %arg5: memref<128x128xf32, #tpu.memory_space<vmem>>) attributes {dimension_semantics = [#tpu.dimension_semantics<parallel>], iteration_bounds = array<i64: 1>, scalar_prefetch = 0 : i64, scratch_operands = 0 : i64, tpu.core_type = #tpu.core_type<tc>, window_params = [{transform_indices = @transform_0, window_bounds = array<i64: 128, 128>}, {pipeline_mode = #tpu.pipeline_mode<synchronous>, transform_indices = @transform_1, window_bounds = array<i64: 128, 128>}, {pipeline_mode = #tpu.pipeline_mode<synchronous>, transform_indices = @transform_2, window_bounds = array<i64: 1, 128>}, {pipeline_mode = #tpu.pipeline_mode<synchronous>, transform_indices = @transform_3, window_bounds = array<i64: 1, 128>}, {transform_indices = @transform_4, window_bounds = array<i64: 128, 128>}]} {
    %c0 = arith.constant 0 : index
    %c0_0 = arith.constant 0 : index
    %0 = vector.load %arg1[%c0, %c0_0] : memref<128x128xf32, #tpu.memory_space<vmem>>, vector<128x128xf32>
    %cst = arith.constant 0.000000e+00 : f32
    %1 = vector.broadcast %cst : f32 to vector<128x128xf32>
    %2 = arith.maximumf %0, %1 : vector<128x128xf32>
    %c0_1 = arith.constant 0 : index
    %c0_2 = arith.constant 0 : index
    %3 = vector.load %arg2[%c0_1, %c0_2] : memref<128x128xf32, #tpu.memory_space<vmem>>, vector<128x128xf32>
    %cst_3 = arith.constant dense<0.000000e+00> : vector<128x128xf32>
    %4 = tpu.matmul %2, %3, %cst_3 {dimension_numbers = #tpu.dot_dimension_numbers<[1], [0], [0], [1], [0, 0, 1, 1], [], []>} : vector<128x128xf32>, vector<128x128xf32>, vector<128x128xf32> -> vector<128x128xf32>
    %c0_4 = arith.constant 0 : index
    %c0_5 = arith.constant 0 : index
    %5 = vector.load %arg3[%c0_4, %c0_5] : memref<1x128xf32, #tpu.memory_space<vmem>>, vector<1x128xf32>
    %6 = vector.broadcast %5 : vector<1x128xf32> to vector<128x128xf32>
    %7 = arith.mulf %4, %6 : vector<128x128xf32>
    %c0_6 = arith.constant 0 : index
    %c0_7 = arith.constant 0 : index
    %8 = vector.load %arg4[%c0_6, %c0_7] : memref<1x128xf32, #tpu.memory_space<vmem>>, vector<1x128xf32>
    %9 = vector.broadcast %8 : vector<1x128xf32> to vector<128x128xf32>
    %10 = arith.addf %7, %9 : vector<128x128xf32>
    %c0_8 = arith.constant 0 : index
    %c0_9 = arith.constant 0 : index
    %11 = vector.load %arg5[%c0_8, %c0_9] : memref<128x128xf32, #tpu.memory_space<vmem>>, vector<128x128xf32>
    tpu.vector_store %arg5[%c0_8, %c0_9], %10 {strides = array<i32>} : memref<128x128xf32, #tpu.memory_space<vmem>>, vector<128x128xf32>,
    return
  }
  func.func @transform_0(%arg0: i32) -> (i32, i32) {
    %c0_i32 = arith.constant 0 : i32
    %c0_i32_0 = arith.constant 0 : i32
    return %arg0, %c0_i32 : i32, i32
  }
  func.func @transform_1(%arg0: i32) -> (i32, i32) {
    %c0_i32 = arith.constant 0 : i32
    %c0_i32_0 = arith.constant 0 : i32
    %c0_i32_1 = arith.constant 0 : i32
    return %c0_i32, %c0_i32_0 : i32, i32
  }
  func.func @transform_2(%arg0: i32) -> (i32, i32) {
    %c0_i32 = arith.constant 0 : i32
    %c0_i32_0 = arith.constant 0 : i32
    %c0_i32_1 = arith.constant 0 : i32
    return %c0_i32, %c0_i32_0 : i32, i32
  }
  func.func @transform_3(%arg0: i32) -> (i32, i32) {
    %c0_i32 = arith.constant 0 : i32
    %c0_i32_0 = arith.constant 0 : i32
    %c0_i32_1 = arith.constant 0 : i32
    return %c0_i32, %c0_i32_0 : i32, i32
  }
  func.func @transform_4(%arg0: i32) -> (i32, i32) {
    %c0_i32 = arith.constant 0 : i32
    %c0_i32_0 = arith.constant 0 : i32
    return %arg0, %c0_i32 : i32, i32
  }
}

module attributes {stable_mosaic.version = 11 : i64} {
  func.func @_stats_kernel(%arg0: i32, %arg1: memref<128x128xf32, #tpu.memory_space<vmem>>, %arg2: memref<128x128xf32, #tpu.memory_space<vmem>>, %arg3: memref<1x128xf32, #tpu.memory_space<vmem>>, %arg4: memref<1x128xf32, #tpu.memory_space<vmem>>) attributes {dimension_semantics = [#tpu.dimension_semantics<arbitrary>], iteration_bounds = array<i64: 1>, scalar_prefetch = 0 : i64, scratch_operands = 0 : i64, tpu.core_type = #tpu.core_type<tc>, window_params = [{transform_indices = @transform_0, window_bounds = array<i64: 128, 128>}, {pipeline_mode = #tpu.pipeline_mode<synchronous>, transform_indices = @transform_1, window_bounds = array<i64: 128, 128>}, {pipeline_mode = #tpu.pipeline_mode<synchronous>, transform_indices = @transform_2, window_bounds = array<i64: 1, 128>}, {pipeline_mode = #tpu.pipeline_mode<synchronous>, transform_indices = @transform_3, window_bounds = array<i64: 1, 128>}]} {
    %c0_i32 = arith.constant 0 : i32
    %0 = arith.cmpi eq, %arg0, %c0_i32 : i32
    %1 = arith.extui %0 : i1 to i32
    %c0_i32_0 = arith.constant 0 : i32
    %2 = arith.cmpi ne, %1, %c0_i32_0 : i32
    scf.if %2 {
      %cst_15 = arith.constant 0.000000e+00 : f32
      %19 = vector.broadcast %cst_15 : f32 to vector<1x128xf32>
      %c0_16 = arith.constant 0 : index
      %c0_17 = arith.constant 0 : index
      %20 = vector.load %arg3[%c0_16, %c0_17] : memref<1x128xf32, #tpu.memory_space<vmem>>, vector<1x128xf32>
      tpu.vector_store %arg3[%c0_16, %c0_17], %19 {strides = array<i32>} : memref<1x128xf32, #tpu.memory_space<vmem>>, vector<1x128xf32>,
      %cst_18 = arith.constant 0.000000e+00 : f32
      %21 = vector.broadcast %cst_18 : f32 to vector<1x128xf32>
      %c0_19 = arith.constant 0 : index
      %c0_20 = arith.constant 0 : index
      %22 = vector.load %arg4[%c0_19, %c0_20] : memref<1x128xf32, #tpu.memory_space<vmem>>, vector<1x128xf32>
      tpu.vector_store %arg4[%c0_19, %c0_20], %21 {strides = array<i32>} : memref<1x128xf32, #tpu.memory_space<vmem>>, vector<1x128xf32>,
    } else {
    }
    %c0 = arith.constant 0 : index
    %c0_1 = arith.constant 0 : index
    %3 = vector.load %arg1[%c0, %c0_1] : memref<128x128xf32, #tpu.memory_space<vmem>>, vector<128x128xf32>
    %cst = arith.constant 0.000000e+00 : f32
    %4 = vector.broadcast %cst : f32 to vector<128x128xf32>
    %5 = arith.maximumf %3, %4 : vector<128x128xf32>
    %c0_2 = arith.constant 0 : index
    %c0_3 = arith.constant 0 : index
    %6 = vector.load %arg2[%c0_2, %c0_3] : memref<128x128xf32, #tpu.memory_space<vmem>>, vector<128x128xf32>
    %cst_4 = arith.constant dense<0.000000e+00> : vector<128x128xf32>
    %7 = tpu.matmul %5, %6, %cst_4 {dimension_numbers = #tpu.dot_dimension_numbers<[1], [0], [0], [1], [0, 0, 1, 1], [], []>} : vector<128x128xf32>, vector<128x128xf32>, vector<128x128xf32> -> vector<128x128xf32>
    %c0_5 = arith.constant 0 : index
    %c0_6 = arith.constant 0 : index
    %8 = vector.load %arg3[%c0_5, %c0_6] : memref<1x128xf32, #tpu.memory_space<vmem>>, vector<1x128xf32>
    %cst_7 = arith.constant dense<0.000000e+00> : vector<128xf32>
    %9 = vector.multi_reduction <add>, %7, %cst_7 [0] : vector<128x128xf32> to vector<128xf32>
    %10 = vector.shape_cast %9 : vector<128xf32> to vector<1x128xf32>
    %11 = arith.addf %8, %10 : vector<1x128xf32>
    %c0_8 = arith.constant 0 : index
    %c0_9 = arith.constant 0 : index
    %12 = vector.load %arg3[%c0_8, %c0_9] : memref<1x128xf32, #tpu.memory_space<vmem>>, vector<1x128xf32>
    tpu.vector_store %arg3[%c0_8, %c0_9], %11 {strides = array<i32>} : memref<1x128xf32, #tpu.memory_space<vmem>>, vector<1x128xf32>,
    %c0_10 = arith.constant 0 : index
    %c0_11 = arith.constant 0 : index
    %13 = vector.load %arg4[%c0_10, %c0_11] : memref<1x128xf32, #tpu.memory_space<vmem>>, vector<1x128xf32>
    %14 = arith.mulf %7, %7 : vector<128x128xf32>
    %cst_12 = arith.constant dense<0.000000e+00> : vector<128xf32>
    %15 = vector.multi_reduction <add>, %14, %cst_12 [0] : vector<128x128xf32> to vector<128xf32>
    %16 = vector.shape_cast %15 : vector<128xf32> to vector<1x128xf32>
    %17 = arith.addf %13, %16 : vector<1x128xf32>
    %c0_13 = arith.constant 0 : index
    %c0_14 = arith.constant 0 : index
    %18 = vector.load %arg4[%c0_13, %c0_14] : memref<1x128xf32, #tpu.memory_space<vmem>>, vector<1x128xf32>
    tpu.vector_store %arg4[%c0_13, %c0_14], %17 {strides = array<i32>} : memref<1x128xf32, #tpu.memory_space<vmem>>, vector<1x128xf32>,
    return
  }
  func.func @transform_0(%arg0: i32) -> (i32, i32) {
    %c0_i32 = arith.constant 0 : i32
    %c0_i32_0 = arith.constant 0 : i32
    return %arg0, %c0_i32 : i32, i32
  }
  func.func @transform_1(%arg0: i32) -> (i32, i32) {
    %c0_i32 = arith.constant 0 : i32
    %c0_i32_0 = arith.constant 0 : i32
    %c0_i32_1 = arith.constant 0 : i32
    return %c0_i32, %c0_i32_0 : i32, i32
  }
  func.func @transform_2(%arg0: i32) -> (i32, i32) {
    %c0_i32 = arith.constant 0 : i32
    %c0_i32_0 = arith.constant 0 : i32
    %c0_i32_1 = arith.constant 0 : i32
    return %c0_i32, %c0_i32_0 : i32, i32
  }
  func.func @transform_3(%arg0: i32) -> (i32, i32) {
    %c0_i32 = arith.constant 0 : i32
    %c0_i32_0 = arith.constant 0 : i32
    %c0_i32_1 = arith.constant 0 : i32
    return %c0_i32, %c0_i32_0 : i32, i32
  }
}

</mosaic_0001>

<bundles_post_ra>
// kernel: factorized_reduce.2
= control target key start
LH: loop header
LB: loop body
LE: loop exit
PB: predicated region body
PF: predicated region fallthrough
CT: control target
= control target key end

     0   :  { %v421_v56 = vmov 0.0   ;;  %s556_s1 = inlined_call_operand.vmem [shape: f32[128,128], index: 1, kind: input, shape index: {}]   ;;  %s557_s0 = inlined_call_operand.vmem [shape: f32[128,128], index: 0, kind: input, shape index: {}]   ;;  %s558_s2 = inlined_call_operand.vmem [shape: f32[1,128], index: 2, kind: output, shape index: {0}]   ;;  %s559_s3 = inlined_call_operand.vmem [shape: f32[1,128], index: 3, kind: output, shape index: {1}]  }
   0x1   :  { %v51_v0 = vld [vmem:[%s556_s1] sm:$0xff]  ;;  %v52_v1 = vld [vmem:[%s556_s1 + $0x8] sm:$0xff]  ;;  %v53_v2 = vld [vmem:[%s556_s1 + $0x10] sm:$0xff]  ;;  %17 = vst [vmem:[%s558_s2] sm:$0x1] %v421_v56 }
   0x2   :  { %v372_v3 = vpack.c.bf16 %v52_v1, %v51_v0  ;;  %v54_v4 = vld [vmem:[%s556_s1 + $0x18] sm:$0xff]  ;;  %v55_v6 = vld [vmem:[%s556_s1 + $0x20] sm:$0xff]  ;;  %v56_v7 = vld [vmem:[%s556_s1 + $0x28] sm:$0xff]  ;;  %18 = vst [vmem:[%s559_s3] sm:$0x1] %v421_v56 }
   0x3   :  { %v376_v5 = vpack.c.bf16 %v54_v4, %v53_v2  ;;  %v380_v8 = vpack.c.bf16 %v56_v7, %v55_v6  ;;  %v19_v9 = vld [vmem:[%s557_s0] sm:$0xff]  ;;  %v57_v10 = vld [vmem:[%s556_s1 + $0x30] sm:$0xff]  ;;  %v58_v11 = vld [vmem:[%s556_s1 + $0x38] sm:$0xff] }
   0x4   :  { %373 = vmatprep.subr.bf16.mxu0 %v372_v3  ;;  %404 = vmatprep.subr.bf16.mxu1 %v372_v3  ;;  %v35_v12 = vmax.f32 %v19_v9, 0.0  ;;  %v27_v13 = vld [vmem:[%s557_s0 + $0x40] sm:$0xff]  ;;  %v384_v14 = vpack.c.bf16 %v58_v11, %v57_v10  ;;  %v60_v17 = vld [vmem:[%s556_s1 + $0x48] sm:$0xff]  ;;  %v61_v19 = vld [vmem:[%s556_s1 + $0x50] sm:$0xff] }
   0x5   :  { %375 = vmatpush3.bf16.msra.mxu0 %v372_v3  ;;  %412 = vmatpush3.bf16.msra.mxu1 %v372_v3  ;;  %v43_v15 = vmax.f32 %v27_v13, 0.0  ;;  %v59_v16 = vld [vmem:[%s556_s1 + $0x40] sm:$0xff]  ;;  %v62_v20 = vld [vmem:[%s556_s1 + $0x58] sm:$0xff]  ;;  %v64_v23 = vld [vmem:[%s556_s1 + $0x68] sm:$0xff] }
   0x6   :  { %377 = vmatprep.subr.bf16.mxu0 %v376_v5  ;;  %405 = vmatprep.subr.bf16.mxu1 %v376_v5  ;;  %v388_v18 = vpack.c.bf16 %v60_v17, %v59_v16  ;;  %v392_v21 = vpack.c.bf16 %v62_v20, %v61_v19  ;;  %v63_v22 = vld [vmem:[%s556_s1 + $0x60] sm:$0xff]  ;;  %v65_v25 = vld [vmem:[%s556_s1 + $0x70] sm:$0xff]  ;;  %v66_v26 = vld [vmem:[%s556_s1 + $0x78] sm:$0xff] }
   0x7   :  { %348 = vmatprep.mubr.f32.mxu0 %v35_v12  ;;  %360 = vmatprep.mubr.f32.mxu1 %v43_v15  ;;  %v396_v24 = vpack.c.bf16 %v64_v23, %v63_v22  ;;  %v400_v27 = vpack.c.bf16 %v66_v26, %v65_v25  ;;  %v20_v28 = vld [vmem:[%s557_s0 + $0x8] sm:$0xff]  ;;  %v21_v30 = vld [vmem:[%s557_s0 + $0x10] sm:$0xff]  ;;  %v22_v35 = vld [vmem:[%s557_s0 + $0x18] sm:$0xff] }
   0x8   :  { %v28_v29 = vld [vmem:[%s557_s0 + $0x48] sm:$0xff]  ;;  %v29_v31 = vld [vmem:[%s557_s0 + $0x50] sm:$0xff]  ;;  %v36_v32 = vmax.f32 %v20_v28, 0.0  ;;  %v37_v34 = vmax.f32 %v21_v30, 0.0  ;;  %v30_v37 = vld [vmem:[%s557_s0 + $0x58] sm:$0xff]  ;;  %v38_v40 = vmax.f32 %v22_v35, 0.0 }
   0x9   :  { %379 = vmatpush3.bf16.msra.mxu0 %v376_v5  ;;  %413 = vmatpush3.bf16.msra.mxu1 %v376_v5  ;;  %v44_v33 = vmax.f32 %v28_v29, 0.0  ;;  %v45_v36 = vmax.f32 %v29_v31, 0.0  ;;  %v23_v38 = vld [vmem:[%s557_s0 + $0x20] sm:$0xff]  ;;  %v46_v41 = vmax.f32 %v30_v37, 0.0  ;;  %v24_v43 = vld [vmem:[%s557_s0 + $0x28] sm:$0xff]  ;;  %v25_v46 = vld [vmem:[%s557_s0 + $0x30] sm:$0xff] }
   0xa   :  { %381 = vmatprep.subr.bf16.mxu0 %v380_v8  ;;  %406 = vmatprep.subr.bf16.mxu1 %v380_v8  ;;  %v31_v39 = vld [vmem:[%s557_s0 + $0x60] sm:$0xff]  ;;  %v39_v42 = vmax.f32 %v23_v38, 0.0  ;;  %v32_v45 = vld [vmem:[%s557_s0 + $0x68] sm:$0xff]  ;;  %v33_v47 = vld [vmem:[%s557_s0 + $0x70] sm:$0xff]  ;;  %v40_v48 = vmax.f32 %v24_v43, 0.0  ;;  %v41_v50 = vmax.f32 %v25_v46, 0.0 }
   0xb   :  { %v47_v44 = vmax.f32 %v31_v39, 0.0  ;;  %v48_v49 = vmax.f32 %v32_v45, 0.0  ;;  %v26_v51 = vld [vmem:[%s557_s0 + $0x38] sm:$0xff]  ;;  %v49_v52 = vmax.f32 %v33_v47, 0.0 }
   0xc   :  { %v34_v53 = vld [vmem:[%s557_s0 + $0x78] sm:$0xff]  ;;  %v42_v54 = vmax.f32 %v26_v51, 0.0 }
   0xd   :  { %383 = vmatpush3.bf16.msra.mxu0 %v380_v8  ;;  %414 = vmatpush3.bf16.msra.mxu1 %v380_v8  ;;  %v50_v55 = vmax.f32 %v34_v53, 0.0 }
   0xe   :  { %385 = vmatprep.subr.bf16.mxu0 %v384_v14  ;;  %407 = vmatprep.subr.bf16.mxu1 %v384_v14 }
  0x11   :  { %387 = vmatpush3.bf16.msra.mxu0 %v384_v14  ;;  %415 = vmatpush3.bf16.msra.mxu1 %v384_v14 }
  0x12   :  { %389 = vmatprep.subr.bf16.mxu0 %v388_v18  ;;  %408 = vmatprep.subr.bf16.mxu1 %v388_v18 }
  0x15   :  { %391 = vmatpush3.bf16.msra.mxu0 %v388_v18  ;;  %416 = vmatpush3.bf16.msra.mxu1 %v388_v18 }
  0x16   :  { %393 = vmatprep.subr.bf16.mxu0 %v392_v21  ;;  %409 = vmatprep.subr.bf16.mxu1 %v392_v21 }
  0x19   :  { %395 = vmatpush3.bf16.msra.mxu0 %v392_v21  ;;  %417 = vmatpush3.bf16.msra.mxu1 %v392_v21 }
  0x1a   :  { %397 = vmatprep.subr.bf16.mxu0 %v396_v24  ;;  %410 = vmatprep.subr.bf16.mxu1 %v396_v24 }
  0x1d   :  { %399 = vmatpush3.bf16.msra.mxu0 %v396_v24  ;;  %418 = vmatpush3.bf16.msra.mxu1 %v396_v24 }
  0x1e   :  { %401 = vmatprep.subr.bf16.mxu0 %v400_v27  ;;  %411 = vmatprep.subr.bf16.mxu1 %v400_v27 }
  0x21   :  { %403 = vmatpush3.bf16.msra.mxu0 %v400_v27  ;;  %419 = vmatpush3.bf16.msra.mxu1 %v400_v27 }
  0x24   :  { %349 = vmatmul.mubr.f32.vlgmr.msra.gmra.mrb[0].mxu0 %v36_v32  ;;  %361 = vmatmul.mubr.f32.vlgmr.msra.gmra.mrb[0].mxu1 %v44_v33 }
  0x25   :  { %351 = vmatprep.mubr.f32.mxu0 %v37_v34  ;;  %363 = vmatprep.mubr.f32.mxu1 %v45_v36 }
  0x28   :  { %352 = vmatmul.mubr.f32.gmra.mrb[2].mxu0 %v38_v40  ;;  %364 = vmatmul.mubr.f32.gmra.mrb[2].mxu1 %v46_v41 }
  0x29   :  { %354 = vmatprep.mubr.f32.mxu0 %v39_v42  ;;  %366 = vmatprep.mubr.f32.mxu1 %v47_v44 }
  0x2c   :  { %355 = vmatmul.mubr.f32.gmra.mrb[4].mxu0 %v40_v48  ;;  %367 = vmatmul.mubr.f32.gmra.mrb[4].mxu1 %v48_v49 }
  0x2d   :  { %357 = vmatprep.mubr.f32.mxu0 %v41_v50  ;;  %369 = vmatprep.mubr.f32.mxu1 %v49_v52 }
  0x30   :  { %358 = vmatmul.mubr.f32.gmra.mrb[6].mxu0 %v42_v54  ;;  %370 = vmatmul.mubr.f32.gmra.mrb[6].mxu1 %v50_v55 }
  0xf7   :  { %v350_v57 = vpop.f32.mrb[0].mxu0  ;;  %v362_v58 = vpop.f32.mrb[0].mxu1 }
  0xf8   :  { %v238_v59 = vmul.f32 %v350_v57, %v350_v57  ;;  %v133_v60 = vpop.f32.mrb[1].mxu0  ;;  %v173_v61 = vpop.f32.mrb[1].mxu1  ;;  %v246_v33 = vmul.f32 %v362_v58, %v362_v58 }
  0xf9   :  { %v213_v62 = vadd.f32 %v350_v57, %v133_v60  ;;  %v237_v63 = vmul.f32 %v133_v60, %v133_v60  ;;  %v245_v30 = vmul.f32 %v173_v61, %v173_v61 }
  0xfb   :  { %v253_v0 = vadd.f32 %v238_v59, %v237_v63  ;;  %v353_v1 = vpop.f32.mrb[2].mxu0  ;;  %v365_v2 = vpop.f32.mrb[2].mxu1 }
  0xfc   :  { %v143_v3 = vpop.f32.mrb[3].mxu0  ;;  %v183_v4 = vpop.f32.mrb[3].mxu1  ;;  %v240_v7 = vmul.f32 %v353_v1, %v353_v1  ;;  %v248_v39 = vmul.f32 %v365_v2, %v365_v2 }
  0xfd   :  { %v214_v5 = vadd.f32 %v213_v62, %v143_v3  ;;  %v239_v6 = vmul.f32 %v143_v3, %v143_v3  ;;  %v247_v36 = vmul.f32 %v183_v4, %v183_v4  ;;  %v236_v3 = vld [vmem:[%s559_s3] sm:$0x1] }
  0xff   :  { %v254_v8 = vadd.f32 %v253_v0, %v239_v6  ;;  %v356_v9 = vpop.f32.mrb[4].mxu0  ;;  %v215_v10 = vadd.f32 %v353_v1, %v214_v5  ;;  %v368_v11 = vpop.f32.mrb[4].mxu1  ;;  %v212_v0 = vld [vmem:[%s558_s2] sm:$0x1] }
 0x100   :  { %v153_v12 = vpop.f32.mrb[5].mxu0  ;;  %v193_v13 = vpop.f32.mrb[5].mxu1  ;;  %v242_v17 = vmul.f32 %v356_v9, %v356_v9  ;;  %v250_v45 = vmul.f32 %v368_v11, %v368_v11 }
 0x101   :  { %v216_v14 = vadd.f32 %v215_v10, %v153_v12  ;;  %v241_v15 = vmul.f32 %v153_v12, %v153_v12  ;;  %v255_v16 = vadd.f32 %v254_v8, %v240_v7  ;;  %v249_v42 = vmul.f32 %v193_v13, %v193_v13 }
 0x103   :  { %v256_v18 = vadd.f32 %v255_v16, %v241_v15  ;;  %v359_v19 = vpop.f32.mrb[6].mxu0  ;;  %v217_v20 = vadd.f32 %v356_v9, %v216_v14  ;;  %v371_v21 = vpop.f32.mrb[6].mxu1 }
 0x104   :  { %v163_v22 = vpop.f32.mrb[7].mxu0  ;;  %v203_v23 = vpop.f32.mrb[7].mxu1  ;;  %v244_v27 = vmul.f32 %v359_v19, %v359_v19  ;;  %v252_v51 = vmul.f32 %v371_v21, %v371_v21 }
 0x105   :  { %v218_v24 = vadd.f32 %v217_v20, %v163_v22  ;;  %v243_v25 = vmul.f32 %v163_v22, %v163_v22  ;;  %v257_v26 = vadd.f32 %v256_v18, %v242_v17  ;;  %v251_v48 = vmul.f32 %v203_v23, %v203_v23 }
 0x107   :  { %v219_v28 = vadd.f32 %v359_v19, %v218_v24  ;;  %v258_v29 = vadd.f32 %v257_v26, %v243_v25 }
 0x109   :  { %v259_v31 = vadd.f32 %v258_v29, %v244_v27  ;;  %v220_v32 = vadd.f32 %v219_v28, %v173_v61 }
 0x10b   :  { %v260_v34 = vadd.f32 %v259_v31, %v245_v30  ;;  %v221_v35 = vadd.f32 %v362_v58, %v220_v32 }
 0x10d   :  { %v222_v37 = vadd.f32 %v221_v35, %v183_v4  ;;  %v261_v38 = vadd.f32 %v260_v34, %v246_v33 }
 0x10f   :  { %v262_v40 = vadd.f32 %v261_v38, %v247_v36  ;;  %v223_v41 = vadd.f32 %v365_v2, %v222_v37 }
 0x111   :  { %v224_v43 = vadd.f32 %v223_v41, %v193_v13  ;;  %v263_v44 = vadd.f32 %v262_v40, %v248_v39 }
 0x113   :  { %v264_v46 = vadd.f32 %v263_v44, %v249_v42  ;;  %v225_v47 = vadd.f32 %v368_v11, %v224_v43 }
 0x115   :  { %v226_v49 = vadd.f32 %v225_v47, %v203_v23  ;;  %v265_v50 = vadd.f32 %v264_v46, %v250_v45 }
 0x117   :  { %v227_v52 = vadd.f32 %v371_v21, %v226_v49  ;;  %v266_v53 = vadd.f32 %v265_v50, %v251_v48 }
 0x119   :  { %v228_v54 = vrot.slane %v227_v52, 4  ;;  %v267_v55 = vadd.f32 %v266_v53, %v252_v51 }
 0x11b   :  { %v229_v56 = vadd.f32 %v228_v54, %v227_v52  ;;  %v268_v57 = vrot.slane %v267_v55, 4 }
 0x11d   :  { %v230_v58 = vrot.slane %v229_v56, 2  ;;  %v269_v59 = vadd.f32 %v268_v57, %v267_v55 }
 0x11f   :  { %v231_v60 = vadd.f32 %v230_v58, %v229_v56  ;;  %v270_v61 = vrot.slane %v269_v59, 2 }
 0x121   :  { %v232_v62 = vrot.slane %v231_v60, 1  ;;  %v271_v63 = vadd.f32 %v270_v61, %v269_v59 }
 0x123   :  { %v233_v1 = vadd.f32 %v232_v62, %v231_v60  ;;  %v272_v2 = vrot.slane %v271_v63, 1 }
 0x125   :  { %v234_v4 = vadd.f32 %v233_v1, %v212_v0  ;;  %v273_v5 = vadd.f32 %v272_v2, %v271_v63 }
 0x127   :  { %235 = vst [vmem:[%s558_s2] sm:$0x1] %v234_v4  ;;  %v274_v6 = vadd.f32 %v273_v5, %v236_v3 }
 0x129   :  { %275 = vst [vmem:[%s559_s3] sm:$0x1] %v274_v6 }

// kernel: factorized_reduce.3
= control target key start
LH: loop header
LB: loop body
LE: loop exit
PB: predicated region body
PF: predicated region fallthrough
CT: control target
= control target key end

     0   :  { %s589_s1 = inlined_call_operand.vmem [shape: f32[128,128], index: 1, kind: input, shape index: {}]   ;;  %s590_s0 = inlined_call_operand.vmem [shape: f32[128,128], index: 0, kind: input, shape index: {}]   ;;  %s591_s2 = inlined_call_operand.vmem [shape: f32[1,128], index: 2, kind: input, shape index: {}]   ;;  %s592_s3 = inlined_call_operand.vmem [shape: f32[1,128], index: 3, kind: input, shape index: {}]   ;;  %s593_s4 = inlined_call_operand.vmem [shape: f32[128,128], index: 4, kind: output, shape index: {}]  }
   0x1   :  { %v49_v0 = vld [vmem:[%s589_s1] sm:$0xff]  ;;  %v50_v1 = vld [vmem:[%s589_s1 + $0x8] sm:$0xff]  ;;  %v51_v2 = vld [vmem:[%s589_s1 + $0x10] sm:$0xff] }
   0x2   :  { %v366_v3 = vpack.c.bf16 %v50_v1, %v49_v0  ;;  %v52_v4 = vld [vmem:[%s589_s1 + $0x18] sm:$0xff]  ;;  %v53_v6 = vld [vmem:[%s589_s1 + $0x20] sm:$0xff]  ;;  %v54_v7 = vld [vmem:[%s589_s1 + $0x28] sm:$0xff] }
   0x3   :  { %v370_v5 = vpack.c.bf16 %v52_v4, %v51_v2  ;;  %v374_v8 = vpack.c.bf16 %v54_v7, %v53_v6  ;;  %v17_v9 = vld [vmem:[%s590_s0] sm:$0xff]  ;;  %v55_v11 = vld [vmem:[%s589_s1 + $0x30] sm:$0xff]  ;;  %v56_v12 = vld [vmem:[%s589_s1 + $0x38] sm:$0xff] }
   0x4   :  { %367 = vmatprep.subr.bf16.mxu0 %v366_v3  ;;  %398 = vmatprep.subr.bf16.mxu1 %v366_v3  ;;  %v25_v10 = vld [vmem:[%s590_s0 + $0x40] sm:$0xff]  ;;  %v33_v13 = vmax.f32 %v17_v9, 0.0  ;;  %v378_v15 = vpack.c.bf16 %v56_v12, %v55_v11  ;;  %v58_v17 = vld [vmem:[%s589_s1 + $0x48] sm:$0xff]  ;;  %v59_v19 = vld [vmem:[%s589_s1 + $0x50] sm:$0xff] }
   0x5   :  { %369 = vmatpush3.bf16.msra.mxu0 %v366_v3  ;;  %406 = vmatpush3.bf16.msra.mxu1 %v366_v3  ;;  %v41_v14 = vmax.f32 %v25_v10, 0.0  ;;  %v57_v16 = vld [vmem:[%s589_s1 + $0x40] sm:$0xff]  ;;  %v60_v20 = vld [vmem:[%s589_s1 + $0x58] sm:$0xff]  ;;  %v62_v23 = vld [vmem:[%s589_s1 + $0x68] sm:$0xff] }
   0x6   :  { %371 = vmatprep.subr.bf16.mxu0 %v370_v5  ;;  %399 = vmatprep.subr.bf16.mxu1 %v370_v5  ;;  %v382_v18 = vpack.c.bf16 %v58_v17, %v57_v16  ;;  %v386_v21 = vpack.c.bf16 %v60_v20, %v59_v19  ;;  %v61_v22 = vld [vmem:[%s589_s1 + $0x60] sm:$0xff]  ;;  %v63_v25 = vld [vmem:[%s589_s1 + $0x70] sm:$0xff]  ;;  %v64_v26 = vld [vmem:[%s589_s1 + $0x78] sm:$0xff] }
   0x7   :  { %342 = vmatprep.mubr.f32.mxu0 %v33_v13  ;;  %354 = vmatprep.mubr.f32.mxu1 %v41_v14  ;;  %v390_v24 = vpack.c.bf16 %v62_v23, %v61_v22  ;;  %v394_v27 = vpack.c.bf16 %v64_v26, %v63_v25  ;;  %v18_v28 = vld [vmem:[%s590_s0 + $0x8] sm:$0xff]  ;;  %v19_v30 = vld [vmem:[%s590_s0 + $0x10] sm:$0xff]  ;;  %v20_v36 = vld [vmem:[%s590_s0 + $0x18] sm:$0xff] }
   0x8   :  { %v26_v29 = vld [vmem:[%s590_s0 + $0x48] sm:$0xff]  ;;  %v27_v31 = vld [vmem:[%s590_s0 + $0x50] sm:$0xff]  ;;  %v34_v32 = vmax.f32 %v18_v28, 0.0  ;;  %v35_v34 = vmax.f32 %v19_v30, 0.0  ;;  %v28_v37 = vld [vmem:[%s590_s0 + $0x58] sm:$0xff]  ;;  %v36_v40 = vmax.f32 %v20_v36, 0.0 }
   0x9   :  { %373 = vmatpush3.bf16.msra.mxu0 %v370_v5  ;;  %407 = vmatpush3.bf16.msra.mxu1 %v370_v5  ;;  %v42_v33 = vmax.f32 %v26_v29, 0.0  ;;  %v43_v35 = vmax.f32 %v27_v31, 0.0  ;;  %v21_v38 = vld [vmem:[%s590_s0 + $0x20] sm:$0xff]  ;;  %v44_v41 = vmax.f32 %v28_v37, 0.0  ;;  %v22_v44 = vld [vmem:[%s590_s0 + $0x28] sm:$0xff]  ;;  %v23_v46 = vld [vmem:[%s590_s0 + $0x30] sm:$0xff] }
   0xa   :  { %375 = vmatprep.subr.bf16.mxu0 %v374_v8  ;;  %400 = vmatprep.subr.bf16.mxu1 %v374_v8  ;;  %v29_v39 = vld [vmem:[%s590_s0 + $0x60] sm:$0xff]  ;;  %v37_v42 = vmax.f32 %v21_v38, 0.0  ;;  %v30_v45 = vld [vmem:[%s590_s0 + $0x68] sm:$0xff]  ;;  %v31_v47 = vld [vmem:[%s590_s0 + $0x70] sm:$0xff]  ;;  %v38_v48 = vmax.f32 %v22_v44, 0.0  ;;  %v39_v50 = vmax.f32 %v23_v46, 0.0 }
   0xb   :  { %v45_v43 = vmax.f32 %v29_v39, 0.0  ;;  %v46_v49 = vmax.f32 %v30_v45, 0.0  ;;  %v47_v51 = vmax.f32 %v31_v47, 0.0  ;;  %v24_v52 = vld [vmem:[%s590_s0 + $0x38] sm:$0xff]  ;;  %v276_v56 = vld [vmem:[%s591_s2] ss:$0 sm:$0xff] }
   0xc   :  { %v32_v53 = vld [vmem:[%s590_s0 + $0x78] sm:$0xff]  ;;  %v40_v54 = vmax.f32 %v24_v52, 0.0  ;;  %v277_v58 = vld [vmem:[%s592_s3] ss:$0 sm:$0xff] }
   0xd   :  { %377 = vmatpush3.bf16.msra.mxu0 %v374_v8  ;;  %408 = vmatpush3.bf16.msra.mxu1 %v374_v8  ;;  %v48_v55 = vmax.f32 %v32_v53, 0.0 }
   0xe   :  { %379 = vmatprep.subr.bf16.mxu0 %v378_v15  ;;  %401 = vmatprep.subr.bf16.mxu1 %v378_v15 }
  0x11   :  { %381 = vmatpush3.bf16.msra.mxu0 %v378_v15  ;;  %409 = vmatpush3.bf16.msra.mxu1 %v378_v15 }
  0x12   :  { %383 = vmatprep.subr.bf16.mxu0 %v382_v18  ;;  %402 = vmatprep.subr.bf16.mxu1 %v382_v18 }
  0x15   :  { %385 = vmatpush3.bf16.msra.mxu0 %v382_v18  ;;  %410 = vmatpush3.bf16.msra.mxu1 %v382_v18 }
  0x16   :  { %387 = vmatprep.subr.bf16.mxu0 %v386_v21  ;;  %403 = vmatprep.subr.bf16.mxu1 %v386_v21 }
  0x19   :  { %389 = vmatpush3.bf16.msra.mxu0 %v386_v21  ;;  %411 = vmatpush3.bf16.msra.mxu1 %v386_v21 }
  0x1a   :  { %391 = vmatprep.subr.bf16.mxu0 %v390_v24  ;;  %404 = vmatprep.subr.bf16.mxu1 %v390_v24 }
  0x1d   :  { %393 = vmatpush3.bf16.msra.mxu0 %v390_v24  ;;  %412 = vmatpush3.bf16.msra.mxu1 %v390_v24 }
  0x1e   :  { %395 = vmatprep.subr.bf16.mxu0 %v394_v27  ;;  %405 = vmatprep.subr.bf16.mxu1 %v394_v27 }
  0x21   :  { %397 = vmatpush3.bf16.msra.mxu0 %v394_v27  ;;  %413 = vmatpush3.bf16.msra.mxu1 %v394_v27 }
  0x24   :  { %343 = vmatmul.mubr.f32.vlgmr.msra.gmra.mrb[0].mxu0 %v34_v32  ;;  %355 = vmatmul.mubr.f32.vlgmr.msra.gmra.mrb[0].mxu1 %v42_v33 }
  0x25   :  { %345 = vmatprep.mubr.f32.mxu0 %v35_v34  ;;  %357 = vmatprep.mubr.f32.mxu1 %v43_v35 }
  0x28   :  { %346 = vmatmul.mubr.f32.gmra.mrb[2].mxu0 %v36_v40  ;;  %358 = vmatmul.mubr.f32.gmra.mrb[2].mxu1 %v44_v41 }
  0x29   :  { %348 = vmatprep.mubr.f32.mxu0 %v37_v42  ;;  %360 = vmatprep.mubr.f32.mxu1 %v45_v43 }
  0x2c   :  { %349 = vmatmul.mubr.f32.gmra.mrb[4].mxu0 %v38_v48  ;;  %361 = vmatmul.mubr.f32.gmra.mrb[4].mxu1 %v46_v49 }
  0x2d   :  { %351 = vmatprep.mubr.f32.mxu0 %v39_v50  ;;  %363 = vmatprep.mubr.f32.mxu1 %v47_v51 }
  0x30   :  { %352 = vmatmul.mubr.f32.gmra.mrb[6].mxu0 %v40_v54  ;;  %364 = vmatmul.mubr.f32.gmra.mrb[6].mxu1 %v48_v55 }
  0xf7   :  { %v344_v57 = vpop.f32.mrb[0].mxu0  ;;  %v356_v59 = vpop.f32.mrb[0].mxu1 }
  0xf8   :  { %v218_v60 = vmul.f32 %v344_v57, %v276_v56  ;;  %v226_v61 = vmul.f32 %v356_v59, %v276_v56  ;;  %v131_v62 = vpop.f32.mrb[1].mxu0  ;;  %v171_v63 = vpop.f32.mrb[1].mxu1 }
  0xf9   :  { %v217_v0 = vmul.f32 %v276_v56, %v131_v62  ;;  %v225_v1 = vmul.f32 %v276_v56, %v171_v63 }
  0xfa   :  { %v241_v2 = vadd.f32 %v277_v58, %v218_v60  ;;  %v249_v3 = vadd.f32 %v277_v58, %v226_v61 }
  0xfb   :  { %v240_v4 = vadd.f32 %v277_v58, %v217_v0  ;;  %v248_v5 = vadd.f32 %v277_v58, %v225_v1  ;;  %v347_v6 = vpop.f32.mrb[2].mxu0  ;;  %v359_v7 = vpop.f32.mrb[2].mxu1 }
  0xfc   :  { %257 = vst [vmem:[%s593_s4 + $0x8] sm:$0xff] %v241_v2  ;;  %265 = vst [vmem:[%s593_s4 + $0x48] sm:$0xff] %v249_v3  ;;  %v220_v8 = vmul.f32 %v347_v6, %v276_v56  ;;  %v228_v9 = vmul.f32 %v359_v7, %v276_v56  ;;  %v141_v10 = vpop.f32.mrb[3].mxu0  ;;  %v181_v11 = vpop.f32.mrb[3].mxu1 }
  0xfd   :  { %256 = vst [vmem:[%s593_s4] sm:$0xff] %v240_v4  ;;  %264 = vst [vmem:[%s593_s4 + $0x40] sm:$0xff] %v248_v5  ;;  %v219_v12 = vmul.f32 %v276_v56, %v141_v10  ;;  %v227_v13 = vmul.f32 %v276_v56, %v181_v11 }
  0xfe   :  { %v243_v14 = vadd.f32 %v277_v58, %v220_v8  ;;  %v251_v15 = vadd.f32 %v277_v58, %v228_v9 }
  0xff   :  { %v242_v16 = vadd.f32 %v277_v58, %v219_v12  ;;  %v250_v17 = vadd.f32 %v277_v58, %v227_v13  ;;  %v350_v18 = vpop.f32.mrb[4].mxu0  ;;  %v362_v19 = vpop.f32.mrb[4].mxu1 }
 0x100   :  { %259 = vst [vmem:[%s593_s4 + $0x18] sm:$0xff] %v243_v14  ;;  %267 = vst [vmem:[%s593_s4 + $0x58] sm:$0xff] %v251_v15  ;;  %v222_v20 = vmul.f32 %v350_v18, %v276_v56  ;;  %v230_v21 = vmul.f32 %v362_v19, %v276_v56  ;;  %v151_v22 = vpop.f32.mrb[5].mxu0  ;;  %v191_v23 = vpop.f32.mrb[5].mxu1 }
 0x101   :  { %258 = vst [vmem:[%s593_s4 + $0x10] sm:$0xff] %v242_v16  ;;  %266 = vst [vmem:[%s593_s4 + $0x50] sm:$0xff] %v250_v17  ;;  %v221_v24 = vmul.f32 %v276_v56, %v151_v22  ;;  %v229_v25 = vmul.f32 %v276_v56, %v191_v23 }
 0x102   :  { %v245_v26 = vadd.f32 %v277_v58, %v222_v20  ;;  %v253_v27 = vadd.f32 %v277_v58, %v230_v21 }
 0x103   :  { %v244_v28 = vadd.f32 %v277_v58, %v221_v24  ;;  %v252_v29 = vadd.f32 %v277_v58, %v229_v25  ;;  %v353_v30 = vpop.f32.mrb[6].mxu0  ;;  %v365_v31 = vpop.f32.mrb[6].mxu1 }
 0x104   :  { %261 = vst [vmem:[%s593_s4 + $0x28] sm:$0xff] %v245_v26  ;;  %269 = vst [vmem:[%s593_s4 + $0x68] sm:$0xff] %v253_v27  ;;  %v224_v32 = vmul.f32 %v353_v30, %v276_v56  ;;  %v232_v33 = vmul.f32 %v365_v31, %v276_v56  ;;  %v161_v34 = vpop.f32.mrb[7].mxu0  ;;  %v201_v35 = vpop.f32.mrb[7].mxu1 }
 0x105   :  { %260 = vst [vmem:[%s593_s4 + $0x20] sm:$0xff] %v244_v28  ;;  %268 = vst [vmem:[%s593_s4 + $0x60] sm:$0xff] %v252_v29  ;;  %v223_v36 = vmul.f32 %v276_v56, %v161_v34  ;;  %v231_v37 = vmul.f32 %v276_v56, %v201_v35 }
 0x106   :  { %v247_v38 = vadd.f32 %v277_v58, %v224_v32  ;;  %v255_v39 = vadd.f32 %v277_v58, %v232_v33 }
 0x107   :  { %v246_v40 = vadd.f32 %v277_v58, %v223_v36  ;;  %v254_v41 = vadd.f32 %v277_v58, %v231_v37 }
 0x108   :  { %263 = vst [vmem:[%s593_s4 + $0x38] sm:$0xff] %v247_v38  ;;  %271 = vst [vmem:[%s593_s4 + $0x78] sm:$0xff] %v255_v39 }
 0x109   :  { %262 = vst [vmem:[%s593_s4 + $0x30] sm:$0xff] %v246_v40  ;;  %270 = vst [vmem:[%s593_s4 + $0x70] sm:$0xff] %v254_v41 }

</bundles_post_ra>
